<compile_context>
chip_gen: v7x
topology: tpu7x:2x2x1
jax: 0.10.0
libtpu: 0.0.40
codegen_flags: <defaults>
</compile_context>

<pallas_src>
import jax
import jax.numpy as jnp
from jax import lax
from jax.experimental import pallas as pl
from jax.experimental.pallas import tpu as pltpu


def _attention_kernel(x_ref, w_ref, b_ref, u_ref, out_ref, alpha_ref):
    # x_ref:     (TB, S, H)  f32   packed batch rows
    # w_ref:     (H, H)      bf16  PyTorch [out, in] layout (no host-side transpose)
    # b_ref:     (1, H)      f32
    # u_ref:     (1, H)      f32
    # out_ref:   (TB, H)     f32   sublane/lane-dense output block
    # alpha_ref: (TB, S)     f32   lane-dense: sequence axis on lanes
    TB, S, H = x_ref.shape
    x3 = x_ref[...]                                            # (TB, S, H) f32

    # ---- Linear + tanh: one packed bf16 MXU matmul over all TB*S rows, f32 accumulation ----
    # y[n, o] = sum_i x[n, i] * W[o, i]  (== x @ W^T), contracting W's 'in' axis directly.
    xf = x3.reshape(TB * S, H).astype(jnp.bfloat16)
    y = lax.dot_general(
        xf, w_ref[...],
        dimension_numbers=(((1,), (1,)), ((), ())),
        preferred_element_type=jnp.float32)                    # (TB*S, H) f32
    h3 = jnp.tanh(y + b_ref[...]).reshape(TB, S, H)            # (TB, S, H) f32 (VPU/EUP in f32)

    # ---- score[b, s] = sum_h h[b, s, h] * u[h]  (VPU multiply + lane reduce; no M=1 MXU push) ----
    scores = jnp.sum(h3 * u_ref[...].reshape(1, 1, H), axis=-1)        # (TB, S)

    # ---- softmax over the sequence (lane) axis ----
    m = jnp.max(scores, axis=-1, keepdims=True)                        # (TB, 1)
    e = jnp.exp(scores - m)                                            # EUP, f32
    denom = jnp.sum(e, axis=-1, keepdims=True)                         # (TB, 1)
    alpha = e * pl.reciprocal(denom, approx=True)                      # (TB, S), ~1e-3 rel err
    alpha_ref[...] = alpha

    # ---- out[b, :] = sum_s alpha[b, s] * x[b, s, :]  (VPU multiply + sublane reduce) ----
    out_ref[...] = jnp.sum(alpha.reshape(TB, S, 1) * x3, axis=1).astype(out_ref.dtype)


def _choose_tb(B, S, H, *, target_rows=512, x_budget_bytes=8 << 20):
    """Largest divisor of B such that:
      (a) tb % 8 == 0 or tb == B  (keeps the 2-D (tb,H)/(tb,S) output blocks sublane-legal),
      (b) tb*S <= target_rows     (MXU M fill / measured tile-sweep sweet spot),
      (c) the double-buffered f32 (tb,S,H) x block stays within a modest VMEM budget.
    No forced >=2 grid steps: on 1-TC v5e/v6e extra steps are pure overhead; on v7x the
    ("parallel",) batch axis shards across the 2 TensorCores whenever B/tb >= 2 anyway."""
    divisors = [d for d in range(1, B + 1) if B % d == 0]
    ok_align = lambda d: (d % 8 == 0) or (d == B)
    ok_fit = lambda d: (d * S <= target_rows) and (2 * d * S * H * 4 <= x_budget_bytes)
    cands = [d for d in divisors if ok_align(d) and ok_fit(d)]
    if cands:
        return cands[-1]
    cands = [d for d in divisors if ok_fit(d)]      # unaligned fallback (Pallas pads)
    if cands:
        return cands[-1]
    aligned = [d for d in divisors if ok_align(d)]
    return aligned[0] if aligned else 1


def _vmem_limit_bytes(tb, S, H):
    x_blk = 2 * tb * S * H * 4            # double-buffered f32 x block
    w_blk = 2 * H * H * 2                 # bf16 weight (worst case double-buffered)
    prm = 2 * (2 * H * 4)                 # bias + u_context
    out_blk = 2 * (tb * H * 4 + tb * S * 4)
    interm = 4 * tb * S * H * 4           # y / h3 / broadcast headroom
    est = x_blk + w_blk + prm + out_blk + interm
    # 2x headroom + 2 MiB, floor 4 MiB, cap at 64 MiB (v7x physical VMEM per TC).
    return int(min(max(2 * est + (2 << 20), 4 << 20), 64 << 20))


def _build_attention_call(B, S, H, tb, *, single_buffer_params, vmem_limit_bytes):
    # Single-buffer the replicated parameter blocks (they never change across the grid).
    param_mode = pl.Buffered(1) if single_buffer_params else None
    return pl.pallas_call(
        _attention_kernel,
        out_shape=(
            jax.ShapeDtypeStruct((B, H), jnp.float32),   # attention output
            jax.ShapeDtypeStruct((B, S), jnp.float32),   # lane-dense alpha
        ),
        grid_spec=pltpu.PrefetchScalarGridSpec(
            num_scalar_prefetch=0,
            grid=(B // tb,),
            in_specs=[
                pl.BlockSpec((tb, S, H), lambda b: (b, 0, 0)),                      # x slab
                pl.BlockSpec((H, H), lambda b: (0, 0), pipeline_mode=param_mode),   # W (bf16)
                pl.BlockSpec((1, H), lambda b: (0, 0), pipeline_mode=param_mode),   # bias
                pl.BlockSpec((1, H), lambda b: (0, 0), pipeline_mode=param_mode),   # u_context
            ],
            out_specs=[
                pl.BlockSpec((tb, H), lambda b: (b, 0)),
                pl.BlockSpec((tb, S), lambda b: (b, 0)),
            ],
        ),
        compiler_params=pltpu.CompilerParams(
            dimension_semantics=("parallel",),
            vmem_limit_bytes=vmem_limit_bytes,
        ),
    )


def attention_layer(x, weight, bias, u_context, *, tb=None):
    """x: (B, S, H) f32; weight: (H, H) PyTorch [out, in]; bias, u_context: (H,).

    Returns (attention_output (B, H), alpha (B, S, 1)) — same contract as the module."""
    B, S, H = x.shape
    if tb is None:
        tb = _choose_tb(B, S, H)
    assert B % tb == 0, f"tb={tb} must divide batch {B}"

    x = x.astype(jnp.float32)
    w_bf16 = weight.astype(jnp.bfloat16)            # MXU-side dtype; halves W HBM/VMEM bytes
    b2 = bias.reshape(1, H).astype(jnp.float32)
    u2 = u_context.reshape(1, H).astype(jnp.float32)
    vmem_limit = _vmem_limit_bytes(tb, S, H)

    try:
        call = _build_attention_call(B, S, H, tb,
                                     single_buffer_params=True,
                                     vmem_limit_bytes=vmem_limit)
        out2, alpha2 = call(x, w_bf16, b2, u2)
    except Exception:
        # Fallback if this JAX/Mosaic build rejects pipeline_mode=pl.Buffered(1) on inputs.
        call = _build_attention_call(B, S, H, tb,
                                     single_buffer_params=False,
                                     vmem_limit_bytes=vmem_limit)
        out2, alpha2 = call(x, w_bf16, b2, u2)

    # (B, S) -> (B, S, 1): identical row-major flat order, so this reshape is free.
    return out2, alpha2.reshape(B, S, 1)


def _reference(x, weight, bias, u_context):
    h = jnp.tanh(jnp.einsum("bsh,oh->bso", x, weight) + bias)
    scores = jnp.sum(h * u_context, axis=2, keepdims=True)
    alpha = jax.nn.softmax(scores, axis=1)
    out = jnp.sum(x * alpha, axis=1)
    return out, alpha


if __name__ == "__main__":
    # Module: hidden_size=16, bi=True -> effective hidden H = 32.
    B, S, H = 8, 8, 32

    key = jax.random.PRNGKey(0)
    kx, kw, kb, ku = jax.random.split(key, 4)

    x = jax.random.normal(kx, (B, S, H), dtype=jnp.float32)
    # Deterministic parameter init (nn.Linear-style uniform bound, synthetic).
    bound = 1.0 / jnp.sqrt(H)
    weight = jax.random.uniform(kw, (H, H), jnp.float32, -bound, bound)
    bias = jax.random.uniform(kb, (H,), jnp.float32, -bound, bound)
    # u_context ~ N(0, 0.01) as in the PyTorch forward (deterministic here).
    u_context = 0.01 * jax.random.normal(ku, (H,), dtype=jnp.float32)

    # Tolerance covers (a) bf16 inputs to the MXU matmul (f32 accumulation) and
    # (b) pl.reciprocal(approx=True) in the softmax normalizer.
    TOL = dict(atol=1e-2, rtol=1e-2)

    # Main path: _choose_tb(8, 8, 32) -> tb=8, grid=(1,) (single packed MXU matmul, M=64).
    out, alpha = attention_layer(x, weight, bias, u_context)
    jax.block_until_ready((out, alpha))
    ref_out, ref_alpha = _reference(x, weight, bias, u_context)
    assert out.shape == (B, H) and alpha.shape == (B, S, 1)
    assert jnp.allclose(out, ref_out, **TOL)
    assert jnp.allclose(alpha, ref_alpha, **TOL)

    # Tiny-batch path (B=2 -> tb=2, full-block specs).
    x2 = x[:2]
    out2, alpha2 = attention_layer(x2, weight, bias, u_context)
    jax.block_until_ready((out2, alpha2))
    ref_out2, ref_alpha2 = _reference(x2, weight, bias, u_context)
    assert jnp.allclose(out2, ref_out2, **TOL)
    assert jnp.allclose(alpha2, ref_alpha2, **TOL)

    print("KERNEL_OK")
</pallas_src>

<mosaic_0001>
module attributes {stable_mosaic.version = 11 : i64} {
  func.func @_attention_kernel(%arg0: i32, %arg1: memref<8x8x32xf32, #tpu.memory_space<vmem>>, %arg2: memref<32x32xbf16, #tpu.memory_space<vmem>>, %arg3: memref<1x32xf32, #tpu.memory_space<vmem>>, %arg4: memref<1x32xf32, #tpu.memory_space<vmem>>, %arg5: memref<8x32xf32, #tpu.memory_space<vmem>>, %arg6: memref<8x8xf32, #tpu.memory_space<vmem>>) attributes {dimension_semantics = [#tpu.dimension_semantics<parallel>], iteration_bounds = array<i64: 1>, scalar_prefetch = 0 : i64, scratch_operands = 0 : i64, tpu.core_type = #tpu.core_type<tc>, window_params = [{transform_indices = @transform_0, window_bounds = array<i64: 8, 8, 32>}, {pipeline_mode = #tpu.pipeline_mode<synchronous>, transform_indices = @transform_1, window_bounds = array<i64: 32, 32>}, {pipeline_mode = #tpu.pipeline_mode<synchronous>, transform_indices = @transform_2, window_bounds = array<i64: 1, 32>}, {pipeline_mode = #tpu.pipeline_mode<synchronous>, transform_indices = @transform_3, window_bounds = array<i64: 1, 32>}, {transform_indices = @transform_4, window_bounds = array<i64: 8, 32>}, {transform_indices = @transform_5, window_bounds = array<i64: 8, 8>}]} {
    %c0 = arith.constant 0 : index
    %c0_0 = arith.constant 0 : index
    %c0_1 = arith.constant 0 : index
    %0 = vector.load %arg1[%c0, %c0_0, %c0_1] : memref<8x8x32xf32, #tpu.memory_space<vmem>>, vector<8x8x32xf32>
    %1 = vector.shape_cast %0 : vector<8x8x32xf32> to vector<64x32xf32>
    %2 = arith.truncf %1 : vector<64x32xf32> to vector<64x32xbf16>
    %c0_2 = arith.constant 0 : index
    %c0_3 = arith.constant 0 : index
    %3 = vector.load %arg2[%c0_2, %c0_3] : memref<32x32xbf16, #tpu.memory_space<vmem>>, vector<32x32xbf16>
    %cst = arith.constant dense<0.000000e+00> : vector<64x32xf32>
    %4 = tpu.matmul %2, %3, %cst {dimension_numbers = #tpu.dot_dimension_numbers<[1], [1], [0], [0], [0, 0, 1, 0], [], []>} : vector<64x32xbf16>, vector<32x32xbf16>, vector<64x32xf32> -> vector<64x32xf32>
    %c0_4 = arith.constant 0 : index
    %c0_5 = arith.constant 0 : index
    %5 = vector.load %arg3[%c0_4, %c0_5] : memref<1x32xf32, #tpu.memory_space<vmem>>, vector<1x32xf32>
    %6 = vector.broadcast %5 : vector<1x32xf32> to vector<64x32xf32>
    %7 = arith.addf %4, %6 : vector<64x32xf32>
    %8 = math.tanh %7 : vector<64x32xf32>
    %9 = vector.shape_cast %8 : vector<64x32xf32> to vector<8x8x32xf32>
    %c0_6 = arith.constant 0 : index
    %c0_7 = arith.constant 0 : index
    %10 = vector.load %arg4[%c0_6, %c0_7] : memref<1x32xf32, #tpu.memory_space<vmem>>, vector<1x32xf32>
    %11 = vector.shape_cast %10 : vector<1x32xf32> to vector<1x1x32xf32>
    %12 = vector.broadcast %11 : vector<1x1x32xf32> to vector<8x8x32xf32>
    %13 = arith.mulf %9, %12 : vector<8x8x32xf32>
    %cst_8 = arith.constant dense<0.000000e+00> : vector<8x8xf32>
    %14 = vector.multi_reduction <add>, %13, %cst_8 [2] : vector<8x8x32xf32> to vector<8x8xf32>
    %cst_9 = arith.constant dense<0xFF800000> : vector<8xf32>
    %15 = vector.multi_reduction <maximumf>, %14, %cst_9 [1] : vector<8x8xf32> to vector<8xf32>
    %16 = vector.shape_cast %15 : vector<8xf32> to vector<8x1xf32>
    %17 = vector.broadcast %16 : vector<8x1xf32> to vector<8x8xf32>
    %18 = arith.subf %14, %17 : vector<8x8xf32>
    %19 = math.exp %18 : vector<8x8xf32>
    %cst_10 = arith.constant dense<0.000000e+00> : vector<8xf32>
    %20 = vector.multi_reduction <add>, %19, %cst_10 [1] : vector<8x8xf32> to vector<8xf32>
    %21 = vector.shape_cast %20 : vector<8xf32> to vector<8x1xf32>
    %22 = tpu.reciprocal %21 {approx = true} : vector<8x1xf32> -> vector<8x1xf32>
    %23 = vector.broadcast %22 : vector<8x1xf32> to vector<8x8xf32>
    %24 = arith.mulf %19, %23 : vector<8x8xf32>
    %c0_11 = arith.constant 0 : index
    %c0_12 = arith.constant 0 : index
    %25 = vector.load %arg6[%c0_11, %c0_12] : memref<8x8xf32, #tpu.memory_space<vmem>>, vector<8x8xf32>
    tpu.vector_store %arg6[%c0_11, %c0_12], %24 {strides = array<i32>} : memref<8x8xf32, #tpu.memory_space<vmem>>, vector<8x8xf32>,
    %26 = vector.shape_cast %24 : vector<8x8xf32> to vector<8x8x1xf32>
    %27 = vector.broadcast %26 : vector<8x8x1xf32> to vector<8x8x32xf32>
    %28 = arith.mulf %27, %0 : vector<8x8x32xf32>
    %cst_13 = arith.constant dense<0.000000e+00> : vector<8x32xf32>
    %29 = vector.multi_reduction <add>, %28, %cst_13 [1] : vector<8x8x32xf32> to vector<8x32xf32>
    %c0_14 = arith.constant 0 : index
    %c0_15 = arith.constant 0 : index
    %30 = vector.load %arg5[%c0_14, %c0_15] : memref<8x32xf32, #tpu.memory_space<vmem>>, vector<8x32xf32>
    tpu.vector_store %arg5[%c0_14, %c0_15], %29 {strides = array<i32>} : memref<8x32xf32, #tpu.memory_space<vmem>>, vector<8x32xf32>,
    return
  }
  func.func @transform_0(%arg0: i32) -> (i32, i32, i32) {
    %c0_i32 = arith.constant 0 : i32
    %c0_i32_0 = arith.constant 0 : i32
    %c0_i32_1 = arith.constant 0 : i32
    return %arg0, %c0_i32, %c0_i32_0 : i32, i32, i32
  }
  func.func @transform_1(%arg0: i32) -> (i32, i32) {
    %c0_i32 = arith.constant 0 : i32
    %c0_i32_0 = arith.constant 0 : i32
    %c0_i32_1 = arith.constant 0 : i32
    return %c0_i32, %c0_i32_0 : i32, i32
  }
  func.func @transform_2(%arg0: i32) -> (i32, i32) {
    %c0_i32 = arith.constant 0 : i32
    %c0_i32_0 = arith.constant 0 : i32
    %c0_i32_1 = arith.constant 0 : i32
    return %c0_i32, %c0_i32_0 : i32, i32
  }
  func.func @transform_3(%arg0: i32) -> (i32, i32) {
    %c0_i32 = arith.constant 0 : i32
    %c0_i32_0 = arith.constant 0 : i32
    %c0_i32_1 = arith.constant 0 : i32
    return %c0_i32, %c0_i32_0 : i32, i32
  }
  func.func @transform_4(%arg0: i32) -> (i32, i32) {
    %c0_i32 = arith.constant 0 : i32
    %c0_i32_0 = arith.constant 0 : i32
    return %arg0, %c0_i32 : i32, i32
  }
  func.func @transform_5(%arg0: i32) -> (i32, i32) {
    %c0_i32 = arith.constant 0 : i32
    %c0_i32_0 = arith.constant 0 : i32
    return %arg0, %c0_i32 : i32, i32
  }
}

module attributes {stable_mosaic.version = 11 : i64} {
  func.func @_attention_kernel(%arg0: i32, %arg1: memref<8x8x32xf32, #tpu.memory_space<vmem>>, %arg2: memref<32x32xbf16, #tpu.memory_space<vmem>>, %arg3: memref<1x32xf32, #tpu.memory_space<vmem>>, %arg4: memref<1x32xf32, #tpu.memory_space<vmem>>, %arg5: memref<8x32xf32, #tpu.memory_space<vmem>>, %arg6: memref<8x8xf32, #tpu.memory_space<vmem>>) attributes {dimension_semantics = [#tpu.dimension_semantics<parallel>], iteration_bounds = array<i64: 1>, scalar_prefetch = 0 : i64, scratch_operands = 0 : i64, tpu.core_type = #tpu.core_type<tc>, window_params = [{transform_indices = @transform_0, window_bounds = array<i64: 8, 8, 32>}, {pipeline_mode = #tpu.pipeline_mode<synchronous>, transform_indices = @transform_1, window_bounds = array<i64: 32, 32>}, {pipeline_mode = #tpu.pipeline_mode<synchronous>, transform_indices = @transform_2, window_bounds = array<i64: 1, 32>}, {pipeline_mode = #tpu.pipeline_mode<synchronous>, transform_indices = @transform_3, window_bounds = array<i64: 1, 32>}, {transform_indices = @transform_4, window_bounds = array<i64: 8, 32>}, {transform_indices = @transform_5, window_bounds = array<i64: 8, 8>}]} {
    %c0 = arith.constant 0 : index
    %c0_0 = arith.constant 0 : index
    %c0_1 = arith.constant 0 : index
    %0 = vector.load %arg1[%c0, %c0_0, %c0_1] : memref<8x8x32xf32, #tpu.memory_space<vmem>>, vector<8x8x32xf32>
    %1 = vector.shape_cast %0 : vector<8x8x32xf32> to vector<64x32xf32>
    %2 = arith.truncf %1 : vector<64x32xf32> to vector<64x32xbf16>
    %c0_2 = arith.constant 0 : index
    %c0_3 = arith.constant 0 : index
    %3 = vector.load %arg2[%c0_2, %c0_3] : memref<32x32xbf16, #tpu.memory_space<vmem>>, vector<32x32xbf16>
    %cst = arith.constant dense<0.000000e+00> : vector<64x32xf32>
    %4 = tpu.matmul %2, %3, %cst {dimension_numbers = #tpu.dot_dimension_numbers<[1], [1], [0], [0], [0, 0, 1, 0], [], []>} : vector<64x32xbf16>, vector<32x32xbf16>, vector<64x32xf32> -> vector<64x32xf32>
    %c0_4 = arith.constant 0 : index
    %c0_5 = arith.constant 0 : index
    %5 = vector.load %arg3[%c0_4, %c0_5] : memref<1x32xf32, #tpu.memory_space<vmem>>, vector<1x32xf32>
    %6 = vector.broadcast %5 : vector<1x32xf32> to vector<64x32xf32>
    %7 = arith.addf %4, %6 : vector<64x32xf32>
    %8 = math.tanh %7 : vector<64x32xf32>
    %9 = vector.shape_cast %8 : vector<64x32xf32> to vector<8x8x32xf32>
    %c0_6 = arith.constant 0 : index
    %c0_7 = arith.constant 0 : index
    %10 = vector.load %arg4[%c0_6, %c0_7] : memref<1x32xf32, #tpu.memory_space<vmem>>, vector<1x32xf32>
    %11 = vector.shape_cast %10 : vector<1x32xf32> to vector<1x1x32xf32>
    %12 = vector.broadcast %11 : vector<1x1x32xf32> to vector<8x8x32xf32>
    %13 = arith.mulf %9, %12 : vector<8x8x32xf32>
    %cst_8 = arith.constant dense<0.000000e+00> : vector<8x8xf32>
    %14 = vector.multi_reduction <add>, %13, %cst_8 [2] : vector<8x8x32xf32> to vector<8x8xf32>
    %cst_9 = arith.constant dense<0xFF800000> : vector<8xf32>
    %15 = vector.multi_reduction <maximumf>, %14, %cst_9 [1] : vector<8x8xf32> to vector<8xf32>
    %16 = vector.shape_cast %15 : vector<8xf32> to vector<8x1xf32>
    %17 = vector.broadcast %16 : vector<8x1xf32> to vector<8x8xf32>
    %18 = arith.subf %14, %17 : vector<8x8xf32>
    %19 = math.exp %18 : vector<8x8xf32>
    %cst_10 = arith.constant dense<0.000000e+00> : vector<8xf32>
    %20 = vector.multi_reduction <add>, %19, %cst_10 [1] : vector<8x8xf32> to vector<8xf32>
    %21 = vector.shape_cast %20 : vector<8xf32> to vector<8x1xf32>
    %22 = tpu.reciprocal %21 {approx = true} : vector<8x1xf32> -> vector<8x1xf32>
    %23 = vector.broadcast %22 : vector<8x1xf32> to vector<8x8xf32>
    %24 = arith.mulf %19, %23 : vector<8x8xf32>
    %c0_11 = arith.constant 0 : index
    %c0_12 = arith.constant 0 : index
    %25 = vector.load %arg6[%c0_11, %c0_12] : memref<8x8xf32, #tpu.memory_space<vmem>>, vector<8x8xf32>
    tpu.vector_store %arg6[%c0_11, %c0_12], %24 {strides = array<i32>} : memref<8x8xf32, #tpu.memory_space<vmem>>, vector<8x8xf32>,
    %26 = vector.shape_cast %24 : vector<8x8xf32> to vector<8x8x1xf32>
    %27 = vector.broadcast %26 : vector<8x8x1xf32> to vector<8x8x32xf32>
    %28 = arith.mulf %27, %0 : vector<8x8x32xf32>
    %cst_13 = arith.constant dense<0.000000e+00> : vector<8x32xf32>
    %29 = vector.multi_reduction <add>, %28, %cst_13 [1] : vector<8x8x32xf32> to vector<8x32xf32>
    %c0_14 = arith.constant 0 : index
    %c0_15 = arith.constant 0 : index
    %30 = vector.load %arg5[%c0_14, %c0_15] : memref<8x32xf32, #tpu.memory_space<vmem>>, vector<8x32xf32>
    tpu.vector_store %arg5[%c0_14, %c0_15], %29 {strides = array<i32>} : memref<8x32xf32, #tpu.memory_space<vmem>>, vector<8x32xf32>,
    return
  }
  func.func @transform_0(%arg0: i32) -> (i32, i32, i32) {
    %c0_i32 = arith.constant 0 : i32
    %c0_i32_0 = arith.constant 0 : i32
    %c0_i32_1 = arith.constant 0 : i32
    return %arg0, %c0_i32, %c0_i32_0 : i32, i32, i32
  }
  func.func @transform_1(%arg0: i32) -> (i32, i32) {
    %c0_i32 = arith.constant 0 : i32
    %c0_i32_0 = arith.constant 0 : i32
    %c0_i32_1 = arith.constant 0 : i32
    return %c0_i32, %c0_i32_0 : i32, i32
  }
  func.func @transform_2(%arg0: i32) -> (i32, i32) {
    %c0_i32 = arith.constant 0 : i32
    %c0_i32_0 = arith.constant 0 : i32
    %c0_i32_1 = arith.constant 0 : i32
    return %c0_i32, %c0_i32_0 : i32, i32
  }
  func.func @transform_3(%arg0: i32) -> (i32, i32) {
    %c0_i32 = arith.constant 0 : i32
    %c0_i32_0 = arith.constant 0 : i32
    %c0_i32_1 = arith.constant 0 : i32
    return %c0_i32, %c0_i32_0 : i32, i32
  }
  func.func @transform_4(%arg0: i32) -> (i32, i32) {
    %c0_i32 = arith.constant 0 : i32
    %c0_i32_0 = arith.constant 0 : i32
    return %arg0, %c0_i32 : i32, i32
  }
  func.func @transform_5(%arg0: i32) -> (i32, i32) {
    %c0_i32 = arith.constant 0 : i32
    %c0_i32_0 = arith.constant 0 : i32
    return %arg0, %c0_i32 : i32, i32
  }
}

</mosaic_0001>

<bundles_post_ra>
// kernel: tpu_custom_call.1
= control target key start
LH: loop header
LB: loop body
LE: loop exit
PB: predicated region body
PF: predicated region fallthrough
CT: control target
= control target key end

     0   :  { %11 = vsyncpa [#allocation3], 0  ;;  %s1090_s0 = inlined_call_operand.hbm [shape: f32[8,8,32], index: 0, kind: input, shape index: {}]   ;;  %s1091_s1 = inlined_call_operand.hbm [shape: bf16[32,32], index: 1, kind: input, shape index: {}]   ;;  %s1092_s2 = inlined_call_operand.vmem [shape: f32[1,32], index: 2, kind: input, shape index: {}]   ;;  %s1093_s3 = inlined_call_operand.vmem [shape: f32[1,32], index: 3, kind: input, shape index: {}]   ;;  %s1094_s4 = inlined_call_operand.hbm [shape: f32[8,32], index: 4, kind: output, shape index: {0}]   ;;  %s1095_s5 = inlined_call_operand.hbm [shape: f32[8,8], index: 5, kind: output, shape index: {1}]  }
   0x1   :  { %12 = vsyncpa [#allocation6], 0 }
   0x2   :  { %13 = vsyncpa [#allocation4], 0 }
   0x3   :  { %14 = vsyncpa [#allocation9], 0  ;;  %s834_s18 = smov [#allocation2]   ;;  %s738_s22 = scalar_lea.hbm %s1090_s0, 1024 }
   0x4   :  { %s20_s19 = sshll.u32 %s834_s18, 4  ;;  %p739_p0 = scmp.ne.s32.totalorder %s1090_s0, %s738_s22  ;;  %s21_s19 = int_to_ptr.vmem [resolvable:$true] %s20_s19 }
   0x5   :  { %p742_p1 = scmp.lt.u32.totalorder %s738_s22, %s1090_s0 }
   0x7   :  { %p744_p2 = pnand %p742_p1, %p739_p0 }
   0x9   :  { %747 = shalt.err (!%p744_p2)
}
   0xa   :  { %s748_s27 = scalar_lea.vmem %s21_s19, 1024  ;;  %p753_p4 = scmp.lt.s32.totalorder %s21_s19, %s21_s19 }
   0xb   :  { %p749_p3 = scmp.ne.s32.totalorder %s21_s19, %s748_s27  ;;  %p754_p5 = scmp.lt.s32.totalorder %s748_s27, %s748_s27 }
   0xd   :  { %p755_p6 = por %p754_p5, %p753_p4 }
   0xf   :  { %p756_p7 = pnand %p755_p6, %p749_p3 }
  0x11   :  { %759 = shalt.err (!%p756_p7)
}
  0x12   :  { %s835_s28 = smov 128   ;;  %s836_s29 = smov 8  }
  0x13   :  { %26 = dma.hbm_to_vmem [thread:$0]  %s1090_s0, 1024, %s21_s19, [#allocation3], %s835_s28, %s835_s28, %s836_s29  }
  0x14   :  { %s837_s7 = smov [#allocation5]   ;;  %s760_s11 = scalar_lea.hbm %s1091_s1, 256 }
  0x15   :  { %s32_s8 = sshll.u32 %s837_s7, 4  ;;  %p761_p8 = scmp.ne.s32.totalorder %s1091_s1, %s760_s11  ;;  %s33_s8 = int_to_ptr.vmem [resolvable:$true] %s32_s8 }
  0x16   :  { %p764_p9 = scmp.lt.u32.totalorder %s760_s11, %s1091_s1 }
  0x18   :  { %p766_p10 = pnand %p764_p9, %p761_p8 }
  0x1a   :  { %769 = shalt.err (!%p766_p10)
}
  0x1b   :  { %s770_s16 = scalar_lea.vmem %s33_s8, 256  ;;  %p775_p12 = scmp.lt.s32.totalorder %s33_s8, %s33_s8 }
  0x1c   :  { %p771_p11 = scmp.ne.s32.totalorder %s33_s8, %s770_s16  ;;  %p776_p13 = scmp.lt.s32.totalorder %s770_s16, %s770_s16 }
  0x1e   :  { %p777_p0 = por %p776_p13, %p775_p12 }
  0x20   :  { %p778_p1 = pnand %p777_p0, %p771_p11 }
  0x22   :  { %781 = shalt.err (!%p778_p1)
}
  0x23   :  { %s838_s0 = smov 64   ;;  %s839_s17 = smov 4  }
  0x24   :  { %38 = dma.hbm_to_vmem [thread:$0]  %s1091_s1, 256, %s33_s8, [#allocation6], %s838_s0, %s838_s0, %s839_s17  }
  0x25   :  { %826 = dma.done.wait [#allocation3], 1024  }
  0x26   :  { %827 = vsyncadd [#allocation3], 4294966272 }
  0x27   :  { %828 = dma.done.wait [#allocation6], 256  }
  0x28   :  { %829 = vsyncadd [#allocation6], 4294967040  ;;  %vm83_vm0 = vcmask 261120   ;;  %v702_v0 = vld [vmem:[#allocation5] sm:$0xff]   ;;  %v703_v1 = vld [vmem:[#allocation5 + $0x8] sm:$0xff]   ;;  %v222_v58 = vlaneseq  ;;  %vm256_vm1 = vcmask 1041409  }
  0x29   :  { %687 = vmatprep.subr.msk.bf16.mxu0 %vm83_vm0, %v702_v0  ;;  %v97_v2 = vsel %vm83_vm0, %v702_v0, 0  ;;  %688 = vmatprep.subr.msk.bf16.mxu1 %vm83_vm0, %v702_v0  ;;  %v900_v3 = vld [vmem:[#allocation2] sm:$0xff]  ;;  %v902_v4 = vld [vmem:[#allocation2 + $0x8] sm:$0xff]  ;;  %v100_v9 = vsel %vm83_vm0, %v703_v1, 0  ;;  %v917_v10 = vld [vmem:[#allocation2 + $0x10] sm:$0xff]  ;;  %vm258_vm2 = vcmask 1042434  }
  0x2a   :  { %672 = vmatpush3.bf16.xpose.msra.mxu0 %v97_v2  ;;  %685 = vmatpush3.bf16.xpose.msra.mxu1 %v97_v2  ;;  %v58_v5 = vpack.c.bf16 %v902_v4, %v900_v3  ;;  %v906_v6 = vld [vmem:[#allocation2 + $0x20] sm:$0xff]  ;;  %v908_v7 = vld [vmem:[#allocation2 + $0x28] sm:$0xff]  ;;  %v919_v11 = vld [vmem:[#allocation2 + $0x18] sm:$0xff]  ;;  %v223_v59 = vand.u32 127, %v222_v58  ;;  %v945_v60 = vshrl.u32 %v222_v58, 7  ;;  %vm260_vm3 = vcmask 1043459  }
  0x2b   :  { %689 = vmatprep.subr.msk.bf16.mxu0 %vm83_vm0, %v703_v1  ;;  %690 = vmatprep.subr.msk.bf16.mxu1 %vm83_vm0, %v703_v1  ;;  %v60_v8 = vpack.c.bf16 %v908_v7, %v906_v6  ;;  %v921_v12 = vld [vmem:[#allocation2 + $0x30] sm:$0xff]  ;;  %v923_v13 = vld [vmem:[#allocation2 + $0x38] sm:$0xff]  ;;  %v59_v14 = vpack.c.bf16 %v919_v11, %v917_v10  ;;  %v657_v16 = vld [vmem:[%s1092_s2] ss:$0 sm:$0xff]  ;;  %vm262_vm4 = vcmask 1044484   ;;  %vm264_vm5 = vcmask 1045509  }
  0x2c   :  { %675 = vmatprep.mubr.msk.bf16.mxu0 %vm83_vm0, %v58_v5  ;;  %v61_v15 = vpack.c.bf16 %v923_v13, %v921_v12  ;;  %v664_v33 = vld [vmem:[%s1093_s3] ss:$0 sm:$0xff]  ;;  %v948_v63 = vsub.s32 %v223_v59, %v945_v60  ;;  %vm266_vm6 = vcmask 1046534   ;;  %vm268_vm7 = vcmask 1047559   ;;  %s841_s3 = smov [#allocation8]  }
  0x2d   :  { %679 = vmatprep.mubr.msk.bf16.mxu1 %vm83_vm0, %v60_v8  ;;  %vm271_vm8 = vcmask 64512   ;;  %s643_s22 = sshll.u32 %s841_s3, 4  ;;  %s644_s22 = int_to_ptr.vmem [resolvable:$true] %s643_s22 }
  0x2e   :  { %s782_s23 = scalar_lea.vmem %s644_s22, 128  ;;  %p787_p3 = scmp.lt.s32.totalorder %s644_s22, %s644_s22 }
  0x2f   :  { %p783_p2 = scmp.ne.s32.totalorder %s644_s22, %s782_s23  ;;  %p788_p4 = scmp.lt.s32.totalorder %s782_s23, %s782_s23 }
  0x31   :  { %p789_p5 = por %p788_p4, %p787_p3 }
  0x32   :  { %674 = vmatpush3.bf16.xpose.msra.mxu0 %v100_v9  ;;  %686 = vmatpush3.bf16.xpose.msra.mxu1 %v100_v9 }
  0x33   :  { %p790_p6 = pnand %p789_p5, %p783_p2 }
  0x39   :  { %676 = vmatmul.mubr.msk.bf16.vlgmr.msra.gmra.mrb[0].mxu0 %vm83_vm0, %v59_v14  ;;  %680 = vmatmul.mubr.msk.bf16.vlgmr.msra.gmra.mrb[0].mxu1 %vm83_vm0, %v61_v15 }
 0x10c   :  { %v677_v17 = vpop.f32.mrb[0].mxu0  ;;  %v681_v18 = vpop.f32.mrb[0].mxu1 }
 0x10d   :  { %v145_v19 = vadd.f32 %v677_v17, %v657_v16  ;;  %v136_v20 = vpop.f32.mrb[1].mxu0  ;;  %v152_v21 = vpop.f32.mrb[1].mxu1  ;;  %v161_v32 = vadd.f32 %v681_v18, %v657_v16 }
 0x10e   :  { %v137_v22 = vadd.f32 %v657_v16, %v136_v20  ;;  %v678_v23 = vpop.f32.mrb[2].mxu0  ;;  %v682_v24 = vpop.f32.mrb[2].mxu1  ;;  %v153_v29 = vadd.f32 %v657_v16, %v152_v21 }
 0x10f   :  { %704 = vtanh.f32 %v145_v19  ;;  %v148_v25 = vadd.f32 %v678_v23, %v657_v16  ;;  %v139_v26 = vpop.f32.mrb[3].mxu0  ;;  %v155_v27 = vpop.f32.mrb[3].mxu1  ;;  %v164_v31 = vadd.f32 %v682_v24, %v657_v16 }
 0x110   :  { %706 = vtanh.f32 %v137_v22  ;;  %v140_v28 = vadd.f32 %v657_v16, %v139_v26  ;;  %v156_v30 = vadd.f32 %v657_v16, %v155_v27 }
 0x111   :  { %708 = vtanh.f32 %v148_v25 }
 0x112   :  { %710 = vtanh.f32 %v140_v28 }
 0x113   :  { %712 = vtanh.f32 %v153_v29 }
 0x114   :  { %714 = vtanh.f32 %v156_v30  ;;  %v840_v30 = vmov 0  }
 0x115   :  { %716 = vtanh.f32 %v164_v31  ;;  %701 = vset.pattern.permute.xlu0 %v840_v30  ;;  %700 = vset.pattern.permute.xlu1 %v840_v30  ;;  %v278_v31 = vsub.s32 0, %v945_v60 }
 0x116   :  { %718 = vtanh.f32 %v161_v32  ;;  %v282_v32 = vsub.s32 1, %v945_v60 }
 0x119   :  { %v705_v34 = vpop.eup %704 }
 0x11a   :  { %v707_v35 = vpop.eup %706  ;;  %v184_v36 = vmul.f32 %v705_v34, %v664_v33  ;;  %v290_v34 = vsub.s32 3, %v945_v60 }
 0x11b   :  { %v709_v37 = vpop.eup %708  ;;  %v182_v38 = vmul.f32 %v707_v35, %v664_v33 }
 0x11c   :  { %v711_v39 = vpop.eup %710  ;;  %v196_v40 = vsel %vm83_vm0, %v184_v36, 0.0  ;;  %v185_v41 = vmul.f32 %v709_v37, %v664_v33 }
 0x11d   :  { %197 = vadd.xlane.f32.xlu1 %v196_v40  ;;  %v190_v42 = vsel %vm83_vm0, %v182_v38, 0.0  ;;  %v183_v43 = vmul.f32 %v711_v39, %v664_v33  ;;  %v713_v44 = vpop.eup %712  ;;  %v294_v39 = vsub.s32 4, %v945_v60 }
 0x11e   :  { %191 = vadd.xlane.f32.xlu0 %v190_v42  ;;  %v715_v45 = vpop.eup %714  ;;  %v199_v46 = vsel %vm83_vm0, %v185_v41, 0.0  ;;  %v186_v50 = vmul.f32 %v713_v44, %v664_v33 }
 0x11f   :  { %v717_v47 = vpop.eup %716  ;;  %v193_v48 = vsel %vm83_vm0, %v183_v43, 0.0  ;;  %v187_v49 = vmul.f32 %v715_v45, %v664_v33 }
 0x120   :  { %v719_v51 = vpop.eup %718  ;;  %v189_v53 = vmul.f32 %v717_v47, %v664_v33  ;;  %v202_v54 = vsel %vm83_vm0, %v186_v50, 0.0  ;;  %v302_v50 = vsub.s32 6, %v945_v60 }
 0x121   :  { %200 = vadd.xlane.f32.xlu1 %v199_v46  ;;  %v205_v52 = vsel %vm83_vm0, %v187_v49, 0.0  ;;  %v188_v55 = vmul.f32 %v719_v51, %v664_v33  ;;  %v286_v33 = vsub.s32 2, %v945_v60  ;;  %v298_v46 = vsub.s32 5, %v945_v60 }
 0x122   :  { %194 = vadd.xlane.f32.xlu0 %v193_v48  ;;  %v211_v56 = vsel %vm83_vm0, %v189_v53, 0.0 }
 0x123   :  { %v208_v57 = vsel %vm83_vm0, %v188_v55, 0.0 }
 0x125   :  { %206 = vadd.xlane.f32.xlu1 %v205_v52 }
 0x126   :  { %203 = vadd.xlane.f32.xlu0 %v202_v54  ;;  %v306_v54 = vsub.s32 7, %v945_v60 }
 0x129   :  { %212 = vadd.xlane.f32.xlu1 %v211_v56 }
 0x12a   :  { %209 = vadd.xlane.f32.xlu0 %v208_v57 }
 0x1aa   :  { %v198_v61 = vpop.xlane.xlu1 %197 }
 0x1ab   :  { %v192_v62 = vpop.xlane.xlu0 %191  ;;  %v235_v8 = vrot.slane %v198_v61, %v948_v63 }
 0x1ac   :  { %v227_v2 = vrot.slane %v192_v62, %v948_v63 }
 0x1ae   :  { %v201_v0 = vpop.xlane.xlu1 %200 }
 0x1af   :  { %v195_v1 = vpop.xlane.xlu0 %194  ;;  %v239_v9 = vrot.slane %v201_v0, %v948_v63 }
 0x1b0   :  { %v231_v5 = vrot.slane %v195_v1, %v948_v63 }
 0x1b2   :  { %v257_v14 = vsel %vm256_vm1, %v231_v5, %v227_v2  ;;  %v207_v15 = vpop.xlane.xlu1 %206 }
 0x1b3   :  { %v259_v16 = vsel %vm258_vm2, %v235_v8, %v257_v14  ;;  %v204_v17 = vpop.xlane.xlu0 %203  ;;  %v247_v22 = vrot.slane %v207_v15, %v948_v63 }
 0x1b4   :  { %v261_v18 = vsel %vm260_vm3, %v239_v9, %v259_v16  ;;  %v243_v19 = vrot.slane %v204_v17, %v948_v63 }
 0x1b6   :  { %v263_v20 = vsel %vm262_vm4, %v243_v19, %v261_v18  ;;  %v959_v21 = vpop.xlane.xlu1 %212 }
 0x1b7   :  { %v210_v23 = vpop.xlane.xlu0 %209  ;;  %v255_v25 = vrot.slane %v959_v21, %v948_v63  ;;  %v265_v26 = vsel %vm264_vm5, %v247_v22, %v263_v20 }
 0x1b8   :  { %v251_v24 = vrot.slane %v210_v23, %v948_v63 }
 0x1ba   :  { %v267_v27 = vsel %vm266_vm6, %v251_v24, %v265_v26 }
 0x1bb   :  { %v269_v28 = vsel %vm268_vm7, %v255_v25, %v267_v27 }
 0x1bc   :  { %v272_v29 = vsel %vm271_vm8, %v269_v28, -inf }
 0x1bd   :  { %273 = vmax.xlane.f32.xlu0 %v272_v29 }
 0x24a   :  { %v274_v35 = vpop.xlane.xlu0 %273 }
 0x24b   :  { %v279_v36 = vrot.slane %v274_v35, %v278_v31  ;;  %v283_v37 = vrot.slane %v274_v35, %v282_v32  ;;  %v287_v38 = vrot.slane %v274_v35, %v286_v33  ;;  %v291_v40 = vrot.slane %v274_v35, %v290_v34 }
 0x24c   :  { %v295_v47 = vrot.slane %v274_v35, %v294_v39  ;;  %v299_v51 = vrot.slane %v274_v35, %v298_v46  ;;  %v303_v55 = vrot.slane %v274_v35, %v302_v50 }
 0x24d   :  { %v316_v41 = vsub.f32 %v192_v62, %v279_v36  ;;  %v317_v42 = vsub.f32 %v195_v1, %v283_v37  ;;  %v318_v43 = vsub.f32 %v198_v61, %v287_v38  ;;  %v319_v48 = vsub.f32 %v201_v0, %v291_v40 }
 0x24e   :  { %v320_v52 = vsub.f32 %v204_v17, %v295_v47  ;;  %v321_v56 = vsub.f32 %v207_v15, %v299_v51  ;;  %v307_v61 = vrot.slane %v274_v35, %v306_v54  ;;  %v322_v62 = vsub.f32 %v210_v23, %v303_v55 }
 0x24f   :  { %v324_v44 = vmul.f32 1.442695, %v316_v41  ;;  %v326_v45 = vmul.f32 1.442695, %v317_v42  ;;  %v328_v49 = vmul.f32 1.442695, %v318_v43 }
 0x250   :  { %v330_v53 = vmul.f32 1.442695, %v319_v48  ;;  %v332_v57 = vmul.f32 1.442695, %v320_v52  ;;  %v334_v0 = vmul.f32 1.442695, %v321_v56  ;;  %v323_v2 = vsub.f32 %v959_v21, %v307_v61 }
 0x251   :  { %720 = vpow2.f32 %v324_v44  ;;  %v336_v5 = vmul.f32 1.442695, %v322_v62 }
 0x252   :  { %722 = vpow2.f32 %v326_v45  ;;  %v338_v9 = vmul.f32 1.442695, %v323_v2 }
 0x253   :  { %724 = vpow2.f32 %v328_v49 }
 0x254   :  { %726 = vpow2.f32 %v330_v53 }
 0x255   :  { %728 = vpow2.f32 %v332_v57 }
 0x256   :  { %730 = vpow2.f32 %v334_v0 }
 0x257   :  { %732 = vpow2.f32 %v336_v5 }
 0x258   :  { %734 = vpow2.f32 %v338_v9 }
 0x25b   :  { %v721_v58 = vpop.eup %720 }
 0x25c   :  { %v723_v59 = vpop.eup %722  ;;  %349 = vperm.xlu1 %700, %v721_v58  }
 0x25d   :  { %352 = vperm.xlu0 %701, %v723_v59   ;;  %v725_v1 = vpop.eup %724 }
 0x25e   :  { %v727_v8 = vpop.eup %726 }
 0x25f   :  { %v729_v14 = vpop.eup %728 }
 0x260   :  { %355 = vperm.xlu1 %700, %v725_v1   ;;  %v731_v15 = vpop.eup %730 }
 0x261   :  { %v733_v16 = vpop.eup %732 }
 0x262   :  { %v735_v17 = vpop.eup %734 }
 0x264   :  { %358 = vperm.xlu1 %700, %v727_v8  }
 0x268   :  { %361 = vperm.xlu1 %700, %v729_v14  }
 0x26c   :  { %364 = vperm.xlu1 %700, %v731_v15  }
 0x270   :  { %367 = vperm.xlu1 %700, %v733_v16  }
 0x274   :  { %370 = vperm.xlu1 %700, %v735_v17  }
 0x2db   :  { %v350_v18 = vpop.permute.xlu1 %349 }
 0x2dc   :  { %v353_v21 = vpop.permute.xlu0 %352  ;;  %v375_v25 = vrot.slane %v350_v18, %v948_v63 }
 0x2dd   :  { %v379_v24 = vrot.slane %v353_v21, %v948_v63 }
 0x2df   :  { %v356_v19 = vpop.permute.xlu1 %355  ;;  %v404_v30 = vsel %vm256_vm1, %v379_v24, %v375_v25 }
 0x2e0   :  { %v383_v26 = vrot.slane %v356_v19, %v948_v63 }
 0x2e2   :  { %v405_v36 = vsel %vm258_vm2, %v383_v26, %v404_v30 }
 0x2e3   :  { %v359_v20 = vpop.permute.xlu1 %358 }
 0x2e4   :  { %v387_v27 = vrot.slane %v359_v20, %v948_v63 }
 0x2e6   :  { %v406_v38 = vsel %vm260_vm3, %v387_v27, %v405_v36 }
 0x2e7   :  { %v362_v22 = vpop.permute.xlu1 %361 }
 0x2e8   :  { %v391_v28 = vrot.slane %v362_v22, %v948_v63 }
 0x2ea   :  { %v407_v40 = vsel %vm262_vm4, %v391_v28, %v406_v38 }
 0x2eb   :  { %v365_v23 = vpop.permute.xlu1 %364 }
 0x2ec   :  { %v395_v35 = vrot.slane %v365_v23, %v948_v63 }
 0x2ee   :  { %v408_v42 = vsel %vm264_vm5, %v395_v35, %v407_v40 }
 0x2ef   :  { %v368_v29 = vpop.permute.xlu1 %367 }
 0x2f0   :  { %v399_v37 = vrot.slane %v368_v29, %v948_v63 }
 0x2f2   :  { %v409_v44 = vsel %vm266_vm6, %v399_v37, %v408_v42 }
 0x2f3   :  { %v371_v41 = vpop.permute.xlu1 %370 }
 0x2f4   :  { %v403_v43 = vrot.slane %v371_v41, %v948_v63 }
 0x2f6   :  { %v410_v45 = vsel %vm268_vm7, %v403_v43, %v409_v44 }
 0x2f7   :  { %v412_v47 = vsel %vm271_vm8, %v410_v45, 0.0 }
 0x2f8   :  { %413 = vadd.xlane.f32.xlu1 %v412_v47 }
 0x385   :  { %v414_v48 = vpop.xlane.xlu1 %413 }
 0x386   :  { %736 = vrcp.f32 %v414_v48 }
 0x390   :  { %v737_v49 = vpop.eup %736 }
 0x391   :  { %v420_v51 = vrot.slane %v737_v49, %v278_v31  ;;  %v424_v53 = vrot.slane %v737_v49, %v282_v32  ;;  %v428_v56 = vrot.slane %v737_v49, %v286_v33  ;;  %v432_v61 = vrot.slane %v737_v49, %v290_v34 }
 0x392   :  { %v436_v0 = vrot.slane %v737_v49, %v294_v39  ;;  %v440_v32 = vrot.slane %v737_v49, %v298_v46  ;;  %v444_v33 = vrot.slane %v737_v49, %v302_v50  ;;  %v448_v34 = vrot.slane %v737_v49, %v306_v54 }
 0x393   :  { %v457_v52 = vmul.f32 %v721_v58, %v420_v51  ;;  %v458_v55 = vmul.f32 %v723_v59, %v424_v53  ;;  %v459_v57 = vmul.f32 %v725_v1, %v428_v56  ;;  %v460_v62 = vmul.f32 %v727_v8, %v432_v61 }
 0x394   :  { %v461_v31 = vmul.f32 %v729_v14, %v436_v0  ;;  %v462_v58 = vmul.f32 %v731_v15, %v440_v32  ;;  %v463_v59 = vmul.f32 %v733_v16, %v444_v33  ;;  %v464_v1 = vmul.f32 %v735_v17, %v448_v34 }
 0x395   :  { %474 = vperm.xlu0 %701, %v457_v52  }
 0x399   :  { %477 = vperm.xlu0 %701, %v458_v55  }
 0x39d   :  { %480 = vperm.xlu0 %701, %v459_v57  }
 0x3a1   :  { %483 = vperm.xlu0 %701, %v460_v62  }
 0x3a5   :  { %486 = vperm.xlu0 %701, %v461_v31  }
 0x3a9   :  { %489 = vperm.xlu0 %701, %v462_v58  }
 0x3ad   :  { %492 = vperm.xlu0 %701, %v463_v59  }
 0x3b1   :  { %495 = vperm.xlu0 %701, %v464_v1  }
 0x414   :  { %v475_v2 = vpop.permute.xlu0 %474 }
 0x415   :  { %v546_v8 = vmul.f32 %v475_v2, %v900_v3  ;;  %v500_v28 = vrot.slane %v475_v2, %v948_v63 }
 0x417   :  { %v554_v50 = vsel %vm83_vm0, %v546_v8, 0.0 }
 0x418   :  { %v478_v39 = vpop.permute.xlu0 %477  ;;  %v555_v17 = vrot.slane %v554_v50, 4 }
 0x419   :  { %v547_v5 = vmul.f32 %v478_v39, %v902_v4  ;;  %v504_v27 = vrot.slane %v478_v39, %v948_v63 }
 0x41b   :  { %v561_v14 = vsel %vm83_vm0, %v547_v5, 0.0  ;;  %v529_v44 = vsel %vm256_vm1, %v504_v27, %v500_v28 }
 0x41c   :  { %v481_v46 = vpop.permute.xlu0 %480  ;;  %v562_v16 = vrot.slane %v561_v14, 4 }
 0x41d   :  { %v548_v9 = vmul.f32 %v481_v46, %v917_v10  ;;  %v556_v10 = vadd.f32 %v555_v17, %v554_v50  ;;  %v508_v30 = vrot.slane %v481_v46, %v948_v63 }
 0x41e   :  { %v563_v22 = vadd.f32 %v562_v16, %v561_v14 }
 0x41f   :  { %v568_v15 = vsel %vm83_vm0, %v548_v9, 0.0  ;;  %v557_v36 = vrot.slane %v556_v10, 2  ;;  %v530_v49 = vsel %vm258_vm2, %v508_v30, %v529_v44 }
 0x420   :  { %v484_v60 = vpop.permute.xlu0 %483  ;;  %v569_v18 = vrot.slane %v568_v15, 4  ;;  %v564_v29 = vrot.slane %v563_v22, 2 }
 0x421   :  { %v549_v54 = vmul.f32 %v484_v60, %v919_v11  ;;  %v512_v37 = vrot.slane %v484_v60, %v948_v63  ;;  %v558_v53 = vadd.f32 %v557_v36, %v556_v10 }
 0x422   :  { %v570_v21 = vadd.f32 %v569_v18, %v568_v15  ;;  %v565_v48 = vadd.f32 %v564_v29, %v563_v22 }
 0x423   :  { %v575_v19 = vsel %vm83_vm0, %v549_v54, 0.0  ;;  %v531_v56 = vsel %vm260_vm3, %v512_v37, %v530_v49  ;;  %v559_v9 = vrot.slane %v558_v53, 1 }
 0x424   :  { %v576_v4 = vrot.slane %v575_v19, 4  ;;  %v487_v20 = vpop.permute.xlu0 %486  ;;  %v566_v34 = vrot.slane %v565_v48, 1 }
 0x425   :  { %v550_v3 = vmul.f32 %v487_v20, %v906_v6  ;;  %v571_v6 = vrot.slane %v570_v21, 2  ;;  %v516_v41 = vrot.slane %v487_v20, %v948_v63 }
 0x426   :  { %v577_v24 = vadd.f32 %v576_v4, %v575_v19 }
 0x427   :  { %v582_v23 = vsel %vm83_vm0, %v550_v3, 0.0  ;;  %v572_v55 = vadd.f32 %v571_v6, %v570_v21  ;;  %v532_v62 = vsel %vm262_vm4, %v516_v41, %v531_v56 }
 0x428   :  { %v583_v25 = vrot.slane %v582_v23, 4  ;;  %v490_v26 = vpop.permute.xlu0 %489  ;;  %v578_v40 = vrot.slane %v577_v24, 2 }
 0x429   :  { %v551_v11 = vmul.f32 %v490_v26, %v908_v7  ;;  %v520_v45 = vrot.slane %v490_v26, %v948_v63  ;;  %v573_v5 = vrot.slane %v572_v55, 1 }
 0x42a   :  { %v584_v35 = vadd.f32 %v583_v25, %v582_v23  ;;  %v579_v61 = vadd.f32 %v578_v40, %v577_v24 }
 0x42b   :  { %v589_v38 = vsel %vm83_vm0, %v551_v11, 0.0  ;;  %v533_v58 = vsel %vm264_vm5, %v520_v45, %v532_v62 }
 0x42c   :  { %v590_v42 = vrot.slane %v589_v38, 4  ;;  %v493_v43 = vpop.permute.xlu0 %492  ;;  %v585_v7 = vrot.slane %v584_v35, 2  ;;  %v580_v14 = vrot.slane %v579_v61, 1 }
 0x42d   :  { %v552_v47 = vmul.f32 %v493_v43, %v921_v12  ;;  %v524_v52 = vrot.slane %v493_v43, %v948_v63 }
 0x42e   :  { %v591_v51 = vadd.f32 %v590_v42, %v589_v38  ;;  %v586_v32 = vadd.f32 %v585_v7, %v584_v35 }
 0x42f   :  { %v596_v57 = vsel %vm83_vm0, %v552_v47, 0.0  ;;  %v534_v39 = vsel %vm266_vm6, %v524_v52, %v533_v58 }
 0x430   :  { %v592_v0 = vrot.slane %v591_v51, 2  ;;  %v597_v31 = vrot.slane %v596_v57, 4  ;;  %v496_v12 = vpop.permute.xlu0 %495 }
 0x431   :  { %v528_v33 = vrot.slane %v496_v12, %v948_v63  ;;  %v553_v59 = vmul.f32 %v496_v12, %v923_v13  ;;  %v587_v63 = vrot.slane %v586_v32, 1 }
 0x432   :  { %v593_v1 = vadd.f32 %v592_v0, %v591_v51  ;;  %v598_v2 = vadd.f32 %v597_v31, %v596_v57 }
 0x433   :  { %v603_v8 = vsel %vm83_vm0, %v553_v59, 0.0  ;;  %v535_v46 = vsel %vm268_vm7, %v528_v33, %v534_v39 }
 0x434   :  { %v599_v50 = vrot.slane %v598_v2, 2  ;;  %v604_v15 = vrot.slane %v603_v8, 4  ;;  %537 = vst.msk [vmem:[#allocation8] sm:$0xff] %vm271_vm8, %v535_v46 }
 0x435   :  { %793 = shalt.err (!%p790_p6)
}
 0x436   :  { %s794_s26 = scalar_lea.hbm %s1095_s5, 128 }
 0x437   :  { %p795_p7 = scmp.ne.s32.totalorder %s1095_s5, %s794_s26  ;;  %p798_p8 = scmp.lt.u32.totalorder %s794_s26, %s1095_s5 }
 0x439   :  { %p800_p9 = pnand %p798_p8, %p795_p7 }
 0x43b   :  { %803 = shalt.err (!%p800_p9)
}
 0x43c   :  { %646 = dma.vmem_to_hbm [thread:$0]  %s644_s22, 128, %s1095_s5, [#allocation9]   ;;  %v567_v13 = vadd.f32 %v566_v34, %v565_v48  ;;  %v594_v60 = vrot.slane %v593_v1, 1  ;;  %v600_v54 = vadd.f32 %v599_v50, %v598_v2  ;;  %v605_v16 = vadd.f32 %v604_v15, %v603_v8 }
 0x43d   :  { %v574_v17 = vadd.f32 %v573_v5, %v572_v55  ;;  %v560_v18 = vadd.f32 %v559_v9, %v558_v53  ;;  %v581_v19 = vadd.f32 %v580_v14, %v579_v61  ;;  %v588_v3 = vadd.f32 %v587_v63, %v586_v32  ;;  %s842_s5 = smov [#allocation7]  }
 0x43e   :  { %v601_v4 = vrot.slane %v600_v54, 1  ;;  %v606_v20 = vrot.slane %v605_v16, 2  ;;  %v595_v10 = vadd.f32 %v594_v60, %v593_v1  ;;  %s633_s8 = sshll.u32 %s842_s5, 4  ;;  %s634_s8 = int_to_ptr.vmem [resolvable:$true] %s633_s8 }
 0x43f   :  { %v618_v22 = vsel %vm256_vm1, %v567_v13, %v560_v18  ;;  %s804_s9 = scalar_lea.vmem %s634_s8, 128  ;;  %p809_p11 = scmp.lt.s32.totalorder %s634_s8, %s634_s8 }
 0x440   :  { %v607_v21 = vadd.f32 %v606_v20, %v605_v16  ;;  %v619_v23 = vsel %vm258_vm2, %v574_v17, %v618_v22  ;;  %v602_v24 = vadd.f32 %v601_v4, %v600_v54  ;;  %p805_p10 = scmp.ne.s32.totalorder %s634_s8, %s804_s9  ;;  %p810_p12 = scmp.lt.s32.totalorder %s804_s9, %s804_s9 }
 0x441   :  { %v620_v26 = vsel %vm260_vm3, %v581_v19, %v619_v23 }
 0x442   :  { %v608_v25 = vrot.slane %v607_v21, 1  ;;  %v621_v27 = vsel %vm262_vm4, %v588_v3, %v620_v26  ;;  %p811_p13 = por %p810_p12, %p809_p11 }
 0x443   :  { %v622_v28 = vsel %vm264_vm5, %v595_v10, %v621_v27 }
 0x444   :  { %v609_v11 = vadd.f32 %v608_v25, %v607_v21  ;;  %v623_v29 = vsel %vm266_vm6, %v602_v24, %v622_v28  ;;  %p812_p0 = pnand %p811_p13, %p805_p10 }
 0x446   :  { %v624_v30 = vsel %vm268_vm7, %v609_v11, %v623_v29 }
 0x447   :  { %626 = vst.msk [vmem:[#allocation7] sm:$0xff] %vm83_vm0, %v624_v30 }
 0x448   :  { %815 = shalt.err (!%p812_p0)
}
 0x449   :  { %s816_s12 = scalar_lea.hbm %s1094_s4, 128 }
 0x44a   :  { %p817_p1 = scmp.ne.s32.totalorder %s1094_s4, %s816_s12  ;;  %p820_p2 = scmp.lt.u32.totalorder %s816_s12, %s1094_s4 }
 0x44c   :  { %p822_p3 = pnand %p820_p2, %p817_p1 }
 0x44e   :  { %825 = shalt.err (!%p822_p3)
}
 0x44f   :  { %636 = dma.vmem_to_hbm [thread:$0]  %s634_s8, 128, %s1094_s4, [#allocation4]  }
 0x450   :  { %830 = dma.done.wait [#allocation4], 128  }
 0x451   :  { %831 = vsyncadd [#allocation4], 4294967168 }
 0x452   :  { %832 = dma.done.wait [#allocation9], 128  }
 0x453   :  { %833 = vsyncadd [#allocation9], 4294967168 }
 0x454   :  { %653 = vsyncpa [#allocation3], 1 }
 0x455   :  { %654 = vsyncpa [#allocation6], 1 }
 0x456   :  { %655 = vsyncpa [#allocation4], 1 }
 0x457   :  { %656 = vsyncpa [#allocation9], 1 }

// kernel: tpu_custom_call.1
= control target key start
LH: loop header
LB: loop body
LE: loop exit
PB: predicated region body
PF: predicated region fallthrough
CT: control target
= control target key end

     0   :  { %11 = vsyncpa [#allocation3], 0  ;;  %s1090_s0 = inlined_call_operand.hbm [shape: f32[8,8,32], index: 0, kind: input, shape index: {}]   ;;  %s1091_s1 = inlined_call_operand.hbm [shape: bf16[32,32], index: 1, kind: input, shape index: {}]   ;;  %s1092_s2 = inlined_call_operand.vmem [shape: f32[1,32], index: 2, kind: input, shape index: {}]   ;;  %s1093_s3 = inlined_call_operand.vmem [shape: f32[1,32], index: 3, kind: input, shape index: {}]   ;;  %s1094_s4 = inlined_call_operand.hbm [shape: f32[8,32], index: 4, kind: output, shape index: {0}]   ;;  %s1095_s5 = inlined_call_operand.hbm [shape: f32[8,8], index: 5, kind: output, shape index: {1}]  }
   0x1   :  { %12 = vsyncpa [#allocation6], 0 }
   0x2   :  { %13 = vsyncpa [#allocation4], 0 }
   0x3   :  { %14 = vsyncpa [#allocation9], 0  ;;  %s834_s18 = smov [#allocation2]   ;;  %s738_s22 = scalar_lea.hbm %s1090_s0, 1024 }
   0x4   :  { %s20_s19 = sshll.u32 %s834_s18, 4  ;;  %p739_p0 = scmp.ne.s32.totalorder %s1090_s0, %s738_s22  ;;  %s21_s19 = int_to_ptr.vmem [resolvable:$true] %s20_s19 }
   0x5   :  { %p742_p1 = scmp.lt.u32.totalorder %s738_s22, %s1090_s0 }
   0x7   :  { %p744_p2 = pnand %p742_p1, %p739_p0 }
   0x9   :  { %747 = shalt.err (!%p744_p2)
}
   0xa   :  { %s748_s27 = scalar_lea.vmem %s21_s19, 1024  ;;  %p753_p4 = scmp.lt.s32.totalorder %s21_s19, %s21_s19 }
   0xb   :  { %p749_p3 = scmp.ne.s32.totalorder %s21_s19, %s748_s27  ;;  %p754_p5 = scmp.lt.s32.totalorder %s748_s27, %s748_s27 }
   0xd   :  { %p755_p6 = por %p754_p5, %p753_p4 }
   0xf   :  { %p756_p7 = pnand %p755_p6, %p749_p3 }
  0x11   :  { %759 = shalt.err (!%p756_p7)
}
  0x12   :  { %s835_s28 = smov 128   ;;  %s836_s29 = smov 8  }
  0x13   :  { %26 = dma.hbm_to_vmem [thread:$0]  %s1090_s0, 1024, %s21_s19, [#allocation3], %s835_s28, %s835_s28, %s836_s29  }
  0x14   :  { %s837_s7 = smov [#allocation5]   ;;  %s760_s11 = scalar_lea.hbm %s1091_s1, 256 }
  0x15   :  { %s32_s8 = sshll.u32 %s837_s7, 4  ;;  %p761_p8 = scmp.ne.s32.totalorder %s1091_s1, %s760_s11  ;;  %s33_s8 = int_to_ptr.vmem [resolvable:$true] %s32_s8 }
  0x16   :  { %p764_p9 = scmp.lt.u32.totalorder %s760_s11, %s1091_s1 }
  0x18   :  { %p766_p10 = pnand %p764_p9, %p761_p8 }
  0x1a   :  { %769 = shalt.err (!%p766_p10)
}
  0x1b   :  { %s770_s16 = scalar_lea.vmem %s33_s8, 256  ;;  %p775_p12 = scmp.lt.s32.totalorder %s33_s8, %s33_s8 }
  0x1c   :  { %p771_p11 = scmp.ne.s32.totalorder %s33_s8, %s770_s16  ;;  %p776_p13 = scmp.lt.s32.totalorder %s770_s16, %s770_s16 }
  0x1e   :  { %p777_p0 = por %p776_p13, %p775_p12 }
  0x20   :  { %p778_p1 = pnand %p777_p0, %p771_p11 }
  0x22   :  { %781 = shalt.err (!%p778_p1)
}
  0x23   :  { %s838_s0 = smov 64   ;;  %s839_s17 = smov 4  }
  0x24   :  { %38 = dma.hbm_to_vmem [thread:$0]  %s1091_s1, 256, %s33_s8, [#allocation6], %s838_s0, %s838_s0, %s839_s17  }
  0x25   :  { %826 = dma.done.wait [#allocation3], 1024  }
  0x26   :  { %827 = vsyncadd [#allocation3], 4294966272 }
  0x27   :  { %828 = dma.done.wait [#allocation6], 256  }
  0x28   :  { %829 = vsyncadd [#allocation6], 4294967040  ;;  %vm83_vm0 = vcmask 261120   ;;  %v702_v0 = vld [vmem:[#allocation5] sm:$0xff]   ;;  %v703_v1 = vld [vmem:[#allocation5 + $0x8] sm:$0xff]   ;;  %v222_v58 = vlaneseq  ;;  %vm256_vm1 = vcmask 1041409  }
  0x29   :  { %687 = vmatprep.subr.msk.bf16.mxu0 %vm83_vm0, %v702_v0  ;;  %v97_v2 = vsel %vm83_vm0, %v702_v0, 0  ;;  %688 = vmatprep.subr.msk.bf16.mxu1 %vm83_vm0, %v702_v0  ;;  %v900_v3 = vld [vmem:[#allocation2] sm:$0xff]  ;;  %v902_v4 = vld [vmem:[#allocation2 + $0x8] sm:$0xff]  ;;  %v100_v9 = vsel %vm83_vm0, %v703_v1, 0  ;;  %v917_v10 = vld [vmem:[#allocation2 + $0x10] sm:$0xff]  ;;  %vm258_vm2 = vcmask 1042434  }
  0x2a   :  { %672 = vmatpush3.bf16.xpose.msra.mxu0 %v97_v2  ;;  %685 = vmatpush3.bf16.xpose.msra.mxu1 %v97_v2  ;;  %v58_v5 = vpack.c.bf16 %v902_v4, %v900_v3  ;;  %v906_v6 = vld [vmem:[#allocation2 + $0x20] sm:$0xff]  ;;  %v908_v7 = vld [vmem:[#allocation2 + $0x28] sm:$0xff]  ;;  %v919_v11 = vld [vmem:[#allocation2 + $0x18] sm:$0xff]  ;;  %v223_v59 = vand.u32 127, %v222_v58  ;;  %v945_v60 = vshrl.u32 %v222_v58, 7  ;;  %vm260_vm3 = vcmask 1043459  }
  0x2b   :  { %689 = vmatprep.subr.msk.bf16.mxu0 %vm83_vm0, %v703_v1  ;;  %690 = vmatprep.subr.msk.bf16.mxu1 %vm83_vm0, %v703_v1  ;;  %v60_v8 = vpack.c.bf16 %v908_v7, %v906_v6  ;;  %v921_v12 = vld [vmem:[#allocation2 + $0x30] sm:$0xff]  ;;  %v923_v13 = vld [vmem:[#allocation2 + $0x38] sm:$0xff]  ;;  %v59_v14 = vpack.c.bf16 %v919_v11, %v917_v10  ;;  %v657_v16 = vld [vmem:[%s1092_s2] ss:$0 sm:$0xff]  ;;  %vm262_vm4 = vcmask 1044484   ;;  %vm264_vm5 = vcmask 1045509  }
  0x2c   :  { %675 = vmatprep.mubr.msk.bf16.mxu0 %vm83_vm0, %v58_v5  ;;  %v61_v15 = vpack.c.bf16 %v923_v13, %v921_v12  ;;  %v664_v33 = vld [vmem:[%s1093_s3] ss:$0 sm:$0xff]  ;;  %v948_v63 = vsub.s32 %v223_v59, %v945_v60  ;;  %vm266_vm6 = vcmask 1046534   ;;  %vm268_vm7 = vcmask 1047559   ;;  %s841_s3 = smov [#allocation8]  }
  0x2d   :  { %679 = vmatprep.mubr.msk.bf16.mxu1 %vm83_vm0, %v60_v8  ;;  %vm271_vm8 = vcmask 64512   ;;  %s643_s22 = sshll.u32 %s841_s3, 4  ;;  %s644_s22 = int_to_ptr.vmem [resolvable:$true] %s643_s22 }
  0x2e   :  { %s782_s23 = scalar_lea.vmem %s644_s22, 128  ;;  %p787_p3 = scmp.lt.s32.totalorder %s644_s22, %s644_s22 }
  0x2f   :  { %p783_p2 = scmp.ne.s32.totalorder %s644_s22, %s782_s23  ;;  %p788_p4 = scmp.lt.s32.totalorder %s782_s23, %s782_s23 }
  0x31   :  { %p789_p5 = por %p788_p4, %p787_p3 }
  0x32   :  { %674 = vmatpush3.bf16.xpose.msra.mxu0 %v100_v9  ;;  %686 = vmatpush3.bf16.xpose.msra.mxu1 %v100_v9 }
  0x33   :  { %p790_p6 = pnand %p789_p5, %p783_p2 }
  0x39   :  { %676 = vmatmul.mubr.msk.bf16.vlgmr.msra.gmra.mrb[0].mxu0 %vm83_vm0, %v59_v14  ;;  %680 = vmatmul.mubr.msk.bf16.vlgmr.msra.gmra.mrb[0].mxu1 %vm83_vm0, %v61_v15 }
 0x10c   :  { %v677_v17 = vpop.f32.mrb[0].mxu0  ;;  %v681_v18 = vpop.f32.mrb[0].mxu1 }
 0x10d   :  { %v145_v19 = vadd.f32 %v677_v17, %v657_v16  ;;  %v136_v20 = vpop.f32.mrb[1].mxu0  ;;  %v152_v21 = vpop.f32.mrb[1].mxu1  ;;  %v161_v32 = vadd.f32 %v681_v18, %v657_v16 }
 0x10e   :  { %v137_v22 = vadd.f32 %v657_v16, %v136_v20  ;;  %v678_v23 = vpop.f32.mrb[2].mxu0  ;;  %v682_v24 = vpop.f32.mrb[2].mxu1  ;;  %v153_v29 = vadd.f32 %v657_v16, %v152_v21 }
 0x10f   :  { %704 = vtanh.f32 %v145_v19  ;;  %v148_v25 = vadd.f32 %v678_v23, %v657_v16  ;;  %v139_v26 = vpop.f32.mrb[3].mxu0  ;;  %v155_v27 = vpop.f32.mrb[3].mxu1  ;;  %v164_v31 = vadd.f32 %v682_v24, %v657_v16 }
 0x110   :  { %706 = vtanh.f32 %v137_v22  ;;  %v140_v28 = vadd.f32 %v657_v16, %v139_v26  ;;  %v156_v30 = vadd.f32 %v657_v16, %v155_v27 }
 0x111   :  { %708 = vtanh.f32 %v148_v25 }
 0x112   :  { %710 = vtanh.f32 %v140_v28 }
 0x113   :  { %712 = vtanh.f32 %v153_v29 }
 0x114   :  { %714 = vtanh.f32 %v156_v30  ;;  %v840_v30 = vmov 0  }
 0x115   :  { %716 = vtanh.f32 %v164_v31  ;;  %701 = vset.pattern.permute.xlu0 %v840_v30  ;;  %700 = vset.pattern.permute.xlu1 %v840_v30  ;;  %v278_v31 = vsub.s32 0, %v945_v60 }
 0x116   :  { %718 = vtanh.f32 %v161_v32  ;;  %v282_v32 = vsub.s32 1, %v945_v60 }
 0x119   :  { %v705_v34 = vpop.eup %704 }
 0x11a   :  { %v707_v35 = vpop.eup %706  ;;  %v184_v36 = vmul.f32 %v705_v34, %v664_v33  ;;  %v290_v34 = vsub.s32 3, %v945_v60 }
 0x11b   :  { %v709_v37 = vpop.eup %708  ;;  %v182_v38 = vmul.f32 %v707_v35, %v664_v33 }
 0x11c   :  { %v711_v39 = vpop.eup %710  ;;  %v196_v40 = vsel %vm83_vm0, %v184_v36, 0.0  ;;  %v185_v41 = vmul.f32 %v709_v37, %v664_v33 }
 0x11d   :  { %197 = vadd.xlane.f32.xlu1 %v196_v40  ;;  %v190_v42 = vsel %vm83_vm0, %v182_v38, 0.0  ;;  %v183_v43 = vmul.f32 %v711_v39, %v664_v33  ;;  %v713_v44 = vpop.eup %712  ;;  %v294_v39 = vsub.s32 4, %v945_v60 }
 0x11e   :  { %191 = vadd.xlane.f32.xlu0 %v190_v42  ;;  %v715_v45 = vpop.eup %714  ;;  %v199_v46 = vsel %vm83_vm0, %v185_v41, 0.0  ;;  %v186_v50 = vmul.f32 %v713_v44, %v664_v33 }
 0x11f   :  { %v717_v47 = vpop.eup %716  ;;  %v193_v48 = vsel %vm83_vm0, %v183_v43, 0.0  ;;  %v187_v49 = vmul.f32 %v715_v45, %v664_v33 }
 0x120   :  { %v719_v51 = vpop.eup %718  ;;  %v189_v53 = vmul.f32 %v717_v47, %v664_v33  ;;  %v202_v54 = vsel %vm83_vm0, %v186_v50, 0.0  ;;  %v302_v50 = vsub.s32 6, %v945_v60 }
 0x121   :  { %200 = vadd.xlane.f32.xlu1 %v199_v46  ;;  %v205_v52 = vsel %vm83_vm0, %v187_v49, 0.0  ;;  %v188_v55 = vmul.f32 %v719_v51, %v664_v33  ;;  %v286_v33 = vsub.s32 2, %v945_v60  ;;  %v298_v46 = vsub.s32 5, %v945_v60 }
 0x122   :  { %194 = vadd.xlane.f32.xlu0 %v193_v48  ;;  %v211_v56 = vsel %vm83_vm0, %v189_v53, 0.0 }
 0x123   :  { %v208_v57 = vsel %vm83_vm0, %v188_v55, 0.0 }
 0x125   :  { %206 = vadd.xlane.f32.xlu1 %v205_v52 }
 0x126   :  { %203 = vadd.xlane.f32.xlu0 %v202_v54  ;;  %v306_v54 = vsub.s32 7, %v945_v60 }
 0x129   :  { %212 = vadd.xlane.f32.xlu1 %v211_v56 }
 0x12a   :  { %209 = vadd.xlane.f32.xlu0 %v208_v57 }
 0x1aa   :  { %v198_v61 = vpop.xlane.xlu1 %197 }
 0x1ab   :  { %v192_v62 = vpop.xlane.xlu0 %191  ;;  %v235_v8 = vrot.slane %v198_v61, %v948_v63 }
 0x1ac   :  { %v227_v2 = vrot.slane %v192_v62, %v948_v63 }
 0x1ae   :  { %v201_v0 = vpop.xlane.xlu1 %200 }
 0x1af   :  { %v195_v1 = vpop.xlane.xlu0 %194  ;;  %v239_v9 = vrot.slane %v201_v0, %v948_v63 }
 0x1b0   :  { %v231_v5 = vrot.slane %v195_v1, %v948_v63 }
 0x1b2   :  { %v257_v14 = vsel %vm256_vm1, %v231_v5, %v227_v2  ;;  %v207_v15 = vpop.xlane.xlu1 %206 }
 0x1b3   :  { %v259_v16 = vsel %vm258_vm2, %v235_v8, %v257_v14  ;;  %v204_v17 = vpop.xlane.xlu0 %203  ;;  %v247_v22 = vrot.slane %v207_v15, %v948_v63 }
 0x1b4   :  { %v261_v18 = vsel %vm260_vm3, %v239_v9, %v259_v16  ;;  %v243_v19 = vrot.slane %v204_v17, %v948_v63 }
 0x1b6   :  { %v263_v20 = vsel %vm262_vm4, %v243_v19, %v261_v18  ;;  %v959_v21 = vpop.xlane.xlu1 %212 }
 0x1b7   :  { %v210_v23 = vpop.xlane.xlu0 %209  ;;  %v255_v25 = vrot.slane %v959_v21, %v948_v63  ;;  %v265_v26 = vsel %vm264_vm5, %v247_v22, %v263_v20 }
 0x1b8   :  { %v251_v24 = vrot.slane %v210_v23, %v948_v63 }
 0x1ba   :  { %v267_v27 = vsel %vm266_vm6, %v251_v24, %v265_v26 }
 0x1bb   :  { %v269_v28 = vsel %vm268_vm7, %v255_v25, %v267_v27 }
 0x1bc   :  { %v272_v29 = vsel %vm271_vm8, %v269_v28, -inf }
 0x1bd   :  { %273 = vmax.xlane.f32.xlu0 %v272_v29 }
 0x24a   :  { %v274_v35 = vpop.xlane.xlu0 %273 }
 0x24b   :  { %v279_v36 = vrot.slane %v274_v35, %v278_v31  ;;  %v283_v37 = vrot.slane %v274_v35, %v282_v32  ;;  %v287_v38 = vrot.slane %v274_v35, %v286_v33  ;;  %v291_v40 = vrot.slane %v274_v35, %v290_v34 }
 0x24c   :  { %v295_v47 = vrot.slane %v274_v35, %v294_v39  ;;  %v299_v51 = vrot.slane %v274_v35, %v298_v46  ;;  %v303_v55 = vrot.slane %v274_v35, %v302_v50 }
 0x24d   :  { %v316_v41 = vsub.f32 %v192_v62, %v279_v36  ;;  %v317_v42 = vsub.f32 %v195_v1, %v283_v37  ;;  %v318_v43 = vsub.f32 %v198_v61, %v287_v38  ;;  %v319_v48 = vsub.f32 %v201_v0, %v291_v40 }
 0x24e   :  { %v320_v52 = vsub.f32 %v204_v17, %v295_v47  ;;  %v321_v56 = vsub.f32 %v207_v15, %v299_v51  ;;  %v307_v61 = vrot.slane %v274_v35, %v306_v54  ;;  %v322_v62 = vsub.f32 %v210_v23, %v303_v55 }
 0x24f   :  { %v324_v44 = vmul.f32 1.442695, %v316_v41  ;;  %v326_v45 = vmul.f32 1.442695, %v317_v42  ;;  %v328_v49 = vmul.f32 1.442695, %v318_v43 }
 0x250   :  { %v330_v53 = vmul.f32 1.442695, %v319_v48  ;;  %v332_v57 = vmul.f32 1.442695, %v320_v52  ;;  %v334_v0 = vmul.f32 1.442695, %v321_v56  ;;  %v323_v2 = vsub.f32 %v959_v21, %v307_v61 }
 0x251   :  { %720 = vpow2.f32 %v324_v44  ;;  %v336_v5 = vmul.f32 1.442695, %v322_v62 }
 0x252   :  { %722 = vpow2.f32 %v326_v45  ;;  %v338_v9 = vmul.f32 1.442695, %v323_v2 }
 0x253   :  { %724 = vpow2.f32 %v328_v49 }
 0x254   :  { %726 = vpow2.f32 %v330_v53 }
 0x255   :  { %728 = vpow2.f32 %v332_v57 }
 0x256   :  { %730 = vpow2.f32 %v334_v0 }
 0x257   :  { %732 = vpow2.f32 %v336_v5 }
 0x258   :  { %734 = vpow2.f32 %v338_v9 }
 0x25b   :  { %v721_v58 = vpop.eup %720 }
 0x25c   :  { %v723_v59 = vpop.eup %722  ;;  %349 = vperm.xlu1 %700, %v721_v58  }
 0x25d   :  { %352 = vperm.xlu0 %701, %v723_v59   ;;  %v725_v1 = vpop.eup %724 }
 0x25e   :  { %v727_v8 = vpop.eup %726 }
 0x25f   :  { %v729_v14 = vpop.eup %728 }
 0x260   :  { %355 = vperm.xlu1 %700, %v725_v1   ;;  %v731_v15 = vpop.eup %730 }
 0x261   :  { %v733_v16 = vpop.eup %732 }
 0x262   :  { %v735_v17 = vpop.eup %734 }
 0x264   :  { %358 = vperm.xlu1 %700, %v727_v8  }
 0x268   :  { %361 = vperm.xlu1 %700, %v729_v14  }
 0x26c   :  { %364 = vperm.xlu1 %700, %v731_v15  }
 0x270   :  { %367 = vperm.xlu1 %700, %v733_v16  }
 0x274   :  { %370 = vperm.xlu1 %700, %v735_v17  }
 0x2db   :  { %v350_v18 = vpop.permute.xlu1 %349 }
 0x2dc   :  { %v353_v21 = vpop.permute.xlu0 %352  ;;  %v375_v25 = vrot.slane %v350_v18, %v948_v63 }
 0x2dd   :  { %v379_v24 = vrot.slane %v353_v21, %v948_v63 }
 0x2df   :  { %v356_v19 = vpop.permute.xlu1 %355  ;;  %v404_v30 = vsel %vm256_vm1, %v379_v24, %v375_v25 }
 0x2e0   :  { %v383_v26 = vrot.slane %v356_v19, %v948_v63 }
 0x2e2   :  { %v405_v36 = vsel %vm258_vm2, %v383_v26, %v404_v30 }
 0x2e3   :  { %v359_v20 = vpop.permute.xlu1 %358 }
 0x2e4   :  { %v387_v27 = vrot.slane %v359_v20, %v948_v63 }
 0x2e6   :  { %v406_v38 = vsel %vm260_vm3, %v387_v27, %v405_v36 }
 0x2e7   :  { %v362_v22 = vpop.permute.xlu1 %361 }
 0x2e8   :  { %v391_v28 = vrot.slane %v362_v22, %v948_v63 }
 0x2ea   :  { %v407_v40 = vsel %vm262_vm4, %v391_v28, %v406_v38 }
 0x2eb   :  { %v365_v23 = vpop.permute.xlu1 %364 }
 0x2ec   :  { %v395_v35 = vrot.slane %v365_v23, %v948_v63 }
 0x2ee   :  { %v408_v42 = vsel %vm264_vm5, %v395_v35, %v407_v40 }
 0x2ef   :  { %v368_v29 = vpop.permute.xlu1 %367 }
 0x2f0   :  { %v399_v37 = vrot.slane %v368_v29, %v948_v63 }
 0x2f2   :  { %v409_v44 = vsel %vm266_vm6, %v399_v37, %v408_v42 }
 0x2f3   :  { %v371_v41 = vpop.permute.xlu1 %370 }
 0x2f4   :  { %v403_v43 = vrot.slane %v371_v41, %v948_v63 }
 0x2f6   :  { %v410_v45 = vsel %vm268_vm7, %v403_v43, %v409_v44 }
 0x2f7   :  { %v412_v47 = vsel %vm271_vm8, %v410_v45, 0.0 }
 0x2f8   :  { %413 = vadd.xlane.f32.xlu1 %v412_v47 }
 0x385   :  { %v414_v48 = vpop.xlane.xlu1 %413 }
 0x386   :  { %736 = vrcp.f32 %v414_v48 }
 0x390   :  { %v737_v49 = vpop.eup %736 }
 0x391   :  { %v420_v51 = vrot.slane %v737_v49, %v278_v31  ;;  %v424_v53 = vrot.slane %v737_v49, %v282_v32  ;;  %v428_v56 = vrot.slane %v737_v49, %v286_v33  ;;  %v432_v61 = vrot.slane %v737_v49, %v290_v34 }
 0x392   :  { %v436_v0 = vrot.slane %v737_v49, %v294_v39  ;;  %v440_v32 = vrot.slane %v737_v49, %v298_v46  ;;  %v444_v33 = vrot.slane %v737_v49, %v302_v50  ;;  %v448_v34 = vrot.slane %v737_v49, %v306_v54 }
 0x393   :  { %v457_v52 = vmul.f32 %v721_v58, %v420_v51  ;;  %v458_v55 = vmul.f32 %v723_v59, %v424_v53  ;;  %v459_v57 = vmul.f32 %v725_v1, %v428_v56  ;;  %v460_v62 = vmul.f32 %v727_v8, %v432_v61 }
 0x394   :  { %v461_v31 = vmul.f32 %v729_v14, %v436_v0  ;;  %v462_v58 = vmul.f32 %v731_v15, %v440_v32  ;;  %v463_v59 = vmul.f32 %v733_v16, %v444_v33  ;;  %v464_v1 = vmul.f32 %v735_v17, %v448_v34 }
 0x395   :  { %474 = vperm.xlu0 %701, %v457_v52  }
 0x399   :  { %477 = vperm.xlu0 %701, %v458_v55  }
 0x39d   :  { %480 = vperm.xlu0 %701, %v459_v57  }
 0x3a1   :  { %483 = vperm.xlu0 %701, %v460_v62  }
 0x3a5   :  { %486 = vperm.xlu0 %701, %v461_v31  }
 0x3a9   :  { %489 = vperm.xlu0 %701, %v462_v58  }
 0x3ad   :  { %492 = vperm.xlu0 %701, %v463_v59  }
 0x3b1   :  { %495 = vperm.xlu0 %701, %v464_v1  }
 0x414   :  { %v475_v2 = vpop.permute.xlu0 %474 }
 0x415   :  { %v546_v8 = vmul.f32 %v475_v2, %v900_v3  ;;  %v500_v28 = vrot.slane %v475_v2, %v948_v63 }
 0x417   :  { %v554_v50 = vsel %vm83_vm0, %v546_v8, 0.0 }
 0x418   :  { %v478_v39 = vpop.permute.xlu0 %477  ;;  %v555_v17 = vrot.slane %v554_v50, 4 }
 0x419   :  { %v547_v5 = vmul.f32 %v478_v39, %v902_v4  ;;  %v504_v27 = vrot.slane %v478_v39, %v948_v63 }
 0x41b   :  { %v561_v14 = vsel %vm83_vm0, %v547_v5, 0.0  ;;  %v529_v44 = vsel %vm256_vm1, %v504_v27, %v500_v28 }
 0x41c   :  { %v481_v46 = vpop.permute.xlu0 %480  ;;  %v562_v16 = vrot.slane %v561_v14, 4 }
 0x41d   :  { %v548_v9 = vmul.f32 %v481_v46, %v917_v10  ;;  %v556_v10 = vadd.f32 %v555_v17, %v554_v50  ;;  %v508_v30 = vrot.slane %v481_v46, %v948_v63 }
 0x41e   :  { %v563_v22 = vadd.f32 %v562_v16, %v561_v14 }
 0x41f   :  { %v568_v15 = vsel %vm83_vm0, %v548_v9, 0.0  ;;  %v557_v36 = vrot.slane %v556_v10, 2  ;;  %v530_v49 = vsel %vm258_vm2, %v508_v30, %v529_v44 }
 0x420   :  { %v484_v60 = vpop.permute.xlu0 %483  ;;  %v569_v18 = vrot.slane %v568_v15, 4  ;;  %v564_v29 = vrot.slane %v563_v22, 2 }
 0x421   :  { %v549_v54 = vmul.f32 %v484_v60, %v919_v11  ;;  %v512_v37 = vrot.slane %v484_v60, %v948_v63  ;;  %v558_v53 = vadd.f32 %v557_v36, %v556_v10 }
 0x422   :  { %v570_v21 = vadd.f32 %v569_v18, %v568_v15  ;;  %v565_v48 = vadd.f32 %v564_v29, %v563_v22 }
 0x423   :  { %v575_v19 = vsel %vm83_vm0, %v549_v54, 0.0  ;;  %v531_v56 = vsel %vm260_vm3, %v512_v37, %v530_v49  ;;  %v559_v9 = vrot.slane %v558_v53, 1 }
 0x424   :  { %v576_v4 = vrot.slane %v575_v19, 4  ;;  %v487_v20 = vpop.permute.xlu0 %486  ;;  %v566_v34 = vrot.slane %v565_v48, 1 }
 0x425   :  { %v550_v3 = vmul.f32 %v487_v20, %v906_v6  ;;  %v571_v6 = vrot.slane %v570_v21, 2  ;;  %v516_v41 = vrot.slane %v487_v20, %v948_v63 }
 0x426   :  { %v577_v24 = vadd.f32 %v576_v4, %v575_v19 }
 0x427   :  { %v582_v23 = vsel %vm83_vm0, %v550_v3, 0.0  ;;  %v572_v55 = vadd.f32 %v571_v6, %v570_v21  ;;  %v532_v62 = vsel %vm262_vm4, %v516_v41, %v531_v56 }
 0x428   :  { %v583_v25 = vrot.slane %v582_v23, 4  ;;  %v490_v26 = vpop.permute.xlu0 %489  ;;  %v578_v40 = vrot.slane %v577_v24, 2 }
 0x429   :  { %v551_v11 = vmul.f32 %v490_v26, %v908_v7  ;;  %v520_v45 = vrot.slane %v490_v26, %v948_v63  ;;  %v573_v5 = vrot.slane %v572_v55, 1 }
 0x42a   :  { %v584_v35 = vadd.f32 %v583_v25, %v582_v23  ;;  %v579_v61 = vadd.f32 %v578_v40, %v577_v24 }
 0x42b   :  { %v589_v38 = vsel %vm83_vm0, %v551_v11, 0.0  ;;  %v533_v58 = vsel %vm264_vm5, %v520_v45, %v532_v62 }
 0x42c   :  { %v590_v42 = vrot.slane %v589_v38, 4  ;;  %v493_v43 = vpop.permute.xlu0 %492  ;;  %v585_v7 = vrot.slane %v584_v35, 2  ;;  %v580_v14 = vrot.slane %v579_v61, 1 }
 0x42d   :  { %v552_v47 = vmul.f32 %v493_v43, %v921_v12  ;;  %v524_v52 = vrot.slane %v493_v43, %v948_v63 }
 0x42e   :  { %v591_v51 = vadd.f32 %v590_v42, %v589_v38  ;;  %v586_v32 = vadd.f32 %v585_v7, %v584_v35 }
 0x42f   :  { %v596_v57 = vsel %vm83_vm0, %v552_v47, 0.0  ;;  %v534_v39 = vsel %vm266_vm6, %v524_v52, %v533_v58 }
 0x430   :  { %v592_v0 = vrot.slane %v591_v51, 2  ;;  %v597_v31 = vrot.slane %v596_v57, 4  ;;  %v496_v12 = vpop.permute.xlu0 %495 }
 0x431   :  { %v528_v33 = vrot.slane %v496_v12, %v948_v63  ;;  %v553_v59 = vmul.f32 %v496_v12, %v923_v13  ;;  %v587_v63 = vrot.slane %v586_v32, 1 }
 0x432   :  { %v593_v1 = vadd.f32 %v592_v0, %v591_v51  ;;  %v598_v2 = vadd.f32 %v597_v31, %v596_v57 }
 0x433   :  { %v603_v8 = vsel %vm83_vm0, %v553_v59, 0.0  ;;  %v535_v46 = vsel %vm268_vm7, %v528_v33, %v534_v39 }
 0x434   :  { %v599_v50 = vrot.slane %v598_v2, 2  ;;  %v604_v15 = vrot.slane %v603_v8, 4  ;;  %537 = vst.msk [vmem:[#allocation8] sm:$0xff] %vm271_vm8, %v535_v46 }
 0x435   :  { %793 = shalt.err (!%p790_p6)
}
 0x436   :  { %s794_s26 = scalar_lea.hbm %s1095_s5, 128 }
 0x437   :  { %p795_p7 = scmp.ne.s32.totalorder %s1095_s5, %s794_s26  ;;  %p798_p8 = scmp.lt.u32.totalorder %s794_s26, %s1095_s5 }
 0x439   :  { %p800_p9 = pnand %p798_p8, %p795_p7 }
 0x43b   :  { %803 = shalt.err (!%p800_p9)
}
 0x43c   :  { %646 = dma.vmem_to_hbm [thread:$0]  %s644_s22, 128, %s1095_s5, [#allocation9]   ;;  %v567_v13 = vadd.f32 %v566_v34, %v565_v48  ;;  %v594_v60 = vrot.slane %v593_v1, 1  ;;  %v600_v54 = vadd.f32 %v599_v50, %v598_v2  ;;  %v605_v16 = vadd.f32 %v604_v15, %v603_v8 }
 0x43d   :  { %v574_v17 = vadd.f32 %v573_v5, %v572_v55  ;;  %v560_v18 = vadd.f32 %v559_v9, %v558_v53  ;;  %v581_v19 = vadd.f32 %v580_v14, %v579_v61  ;;  %v588_v3 = vadd.f32 %v587_v63, %v586_v32  ;;  %s842_s5 = smov [#allocation7]  }
 0x43e   :  { %v601_v4 = vrot.slane %v600_v54, 1  ;;  %v606_v20 = vrot.slane %v605_v16, 2  ;;  %v595_v10 = vadd.f32 %v594_v60, %v593_v1  ;;  %s633_s8 = sshll.u32 %s842_s5, 4  ;;  %s634_s8 = int_to_ptr.vmem [resolvable:$true] %s633_s8 }
 0x43f   :  { %v618_v22 = vsel %vm256_vm1, %v567_v13, %v560_v18  ;;  %s804_s9 = scalar_lea.vmem %s634_s8, 128  ;;  %p809_p11 = scmp.lt.s32.totalorder %s634_s8, %s634_s8 }
 0x440   :  { %v607_v21 = vadd.f32 %v606_v20, %v605_v16  ;;  %v619_v23 = vsel %vm258_vm2, %v574_v17, %v618_v22  ;;  %v602_v24 = vadd.f32 %v601_v4, %v600_v54  ;;  %p805_p10 = scmp.ne.s32.totalorder %s634_s8, %s804_s9  ;;  %p810_p12 = scmp.lt.s32.totalorder %s804_s9, %s804_s9 }
 0x441   :  { %v620_v26 = vsel %vm260_vm3, %v581_v19, %v619_v23 }
 0x442   :  { %v608_v25 = vrot.slane %v607_v21, 1  ;;  %v621_v27 = vsel %vm262_vm4, %v588_v3, %v620_v26  ;;  %p811_p13 = por %p810_p12, %p809_p11 }
 0x443   :  { %v622_v28 = vsel %vm264_vm5, %v595_v10, %v621_v27 }
 0x444   :  { %v609_v11 = vadd.f32 %v608_v25, %v607_v21  ;;  %v623_v29 = vsel %vm266_vm6, %v602_v24, %v622_v28  ;;  %p812_p0 = pnand %p811_p13, %p805_p10 }
 0x446   :  { %v624_v30 = vsel %vm268_vm7, %v609_v11, %v623_v29 }
 0x447   :  { %626 = vst.msk [vmem:[#allocation7] sm:$0xff] %vm83_vm0, %v624_v30 }
 0x448   :  { %815 = shalt.err (!%p812_p0)
}
 0x449   :  { %s816_s12 = scalar_lea.hbm %s1094_s4, 128 }
 0x44a   :  { %p817_p1 = scmp.ne.s32.totalorder %s1094_s4, %s816_s12  ;;  %p820_p2 = scmp.lt.u32.totalorder %s816_s12, %s1094_s4 }
 0x44c   :  { %p822_p3 = pnand %p820_p2, %p817_p1 }
 0x44e   :  { %825 = shalt.err (!%p822_p3)
}
 0x44f   :  { %636 = dma.vmem_to_hbm [thread:$0]  %s634_s8, 128, %s1094_s4, [#allocation4]  }
 0x450   :  { %830 = dma.done.wait [#allocation4], 128  }
 0x451   :  { %831 = vsyncadd [#allocation4], 4294967168 }
 0x452   :  { %832 = dma.done.wait [#allocation9], 128  }
 0x453   :  { %833 = vsyncadd [#allocation9], 4294967168 }
 0x454   :  { %653 = vsyncpa [#allocation3], 1 }
 0x455   :  { %654 = vsyncpa [#allocation6], 1 }
 0x456   :  { %655 = vsyncpa [#allocation4], 1 }
 0x457   :  { %656 = vsyncpa [#allocation9], 1 }

</bundles_post_ra>
